<compile_context>
chip_gen: v7x
topology: tpu7x:2x2x1
jax: 0.10.0
libtpu: 0.0.40
codegen_flags: <defaults>
</compile_context>

<pallas_src>
import functools

import jax
import jax.numpy as jnp
from jax import lax
from jax.experimental import pallas as pl
from jax.experimental.pallas import tpu as pltpu


def _iot_uni_kernel(z_ref, loss_ref, *, epsilon, iterations, lambda_p,
                    use_bf16_matmul):
    f32 = jnp.float32
    z = z_ref[...].astype(f32)                              # (B, D)
    B = z.shape[0]
    N = B // 2

    # --- cosine similarity: row-normalize, contract feature dim on MXU ---
    sq = jnp.sum(z * z, axis=1, keepdims=True)              # (B, 1)
    zn = z * lax.rsqrt(jnp.maximum(sq, 1e-16))              # ~F.normalize(z, dim=1)
    # TODO(synk): F.cosine_similarity clamps the *product* of the two norms at
    # 1e-8; we clamp each row norm — only differs for near-zero embeddings.
    zn_mm = zn.astype(jnp.bfloat16) if use_bf16_matmul else zn
    cos = lax.dot_general(zn_mm, zn_mm,
                          dimension_numbers=(((1,), (1,)), ((), ())),
                          preferred_element_type=f32)       # (B, B), symmetric

    cost = 1.0 - cos
    cmax = jnp.max(cost)

    # Cost = C * I + (1 - I) * Cost
    row0 = lax.broadcasted_iota(jnp.int32, (B, B), 0)
    col0 = lax.broadcasted_iota(jnp.int32, (B, B), 1)
    cost = jnp.where(row0 == col0, cmax, cost)

    inv_eps = 1.0 / float(epsilon)                          # folded constant
    probs = jnp.exp(cost * (-inv_eps))

    # --- Sinkhorn iterations (transpose-free) ---------------------------
    # Torch per iteration: P = P/rowsum(P); P = (P/colsum(P)).T.
    # Tracking the transpose logically, the physical op sequence is
    # (row, col, col, row) per pair of iterations; values are identical (the
    # transpose only permutes positions) and all consumers below are
    # transpose-invariant, so the final loss is unchanged.
    ones_c = jnp.ones((B, 1), f32)
    ones_r = jnp.ones((1, B), f32)

    def row_norm(p):
        rs = jnp.dot(p, ones_c, preferred_element_type=f32)     # (B, 1) on MXU
        return p * pl.reciprocal(rs, approx=True)

    def col_norm(p):
        cs = jnp.dot(ones_r, p, preferred_element_type=f32)     # (1, B) on MXU
        return p * pl.reciprocal(cs, approx=True)

    def pair_body(_, p):
        p = row_norm(p)
        p = col_norm(p)
        p = col_norm(p)
        p = row_norm(p)
        return p

    if iterations // 2 > 0:
        probs = lax.fori_loop(0, iterations // 2, pair_body, probs)
    if iterations % 2 == 1:
        probs = col_norm(row_norm(probs))

    logp = jnp.log(probs)

    # --- recompute masks (keeps no (B,B) int temporaries live over the loop) ---
    row = lax.broadcasted_iota(jnp.int32, (B, B), 0)
    col = lax.broadcasted_iota(jnp.int32, (B, B), 1)
    eye = row == col
    up = col == (row + N)          # Probs.diag(+N)
    dn = row == (col + N)          # Probs.diag(-N)
    pos_mask = jnp.logical_or(up, dn)

    pos_logp = jnp.sum(jnp.where(pos_mask, logp, 0.0))
    total_p = jnp.sum(probs)
    diag_p = jnp.sum(jnp.where(eye, probs, 0.0))
    total_logp = jnp.sum(logp)
    diag_logp = jnp.sum(jnp.where(eye, logp, 0.0))

    n_off = float(B * B - B)

    def s11(x):
        return jnp.reshape(x, (1, 1))

    # L_IOT_CL = -sum(log Probs over the two positive-pair diagonals) / (2N)
    l_cl = s11(-pos_logp / (2.0 * N))

    # Uniformity loss: kl_div(log P, Q) with Q = P on-diag, mean_off off-diag,
    # 'mean' reduction.  Diagonal terms vanish (q == p); off-diagonal terms are
    # mean_off * (log mean_off - log p_ij).
    mean_off = s11((total_p - diag_p) / n_off)
    sum_off_logp = s11(total_logp - diag_logp)
    kl = mean_off * (n_off * jnp.log(mean_off) - sum_off_logp) * (1.0 / float(B * B))

    loss_ref[...] = l_cl + lambda_p * kl


def iot_uni_loss(z, *, epsilon=0.5, iterations=10, lambda_p=0.2,
                 use_bf16_matmul=False):
    """Pallas implementation of iot_uni.forward(z). Returns scalar loss."""
    B, D = z.shape
    assert B % 2 == 0, "batch size must be even (2N)"
    kernel = functools.partial(
        _iot_uni_kernel,
        epsilon=float(epsilon),
        iterations=int(iterations),
        lambda_p=float(lambda_p),
        use_bf16_matmul=bool(use_bf16_matmul),
    )
    # VMEM budget: (B,D) input + a handful of live (B,B) f32 temporaries.
    itemsize = jnp.dtype(z.dtype).itemsize
    needed = 2 * B * D * itemsize + 8 * B * B * 4 + (2 << 20)
    vmem_limit = int(min(max(needed, 32 * 1024 * 1024), 64 * 1024 * 1024))

    out = pl.pallas_call(
        kernel,
        out_shape=jax.ShapeDtypeStruct((1, 1), jnp.float32),
        in_specs=[pl.BlockSpec((B, D), lambda: (0, 0))],
        out_specs=pl.BlockSpec((1, 1), lambda: (0, 0)),
        compiler_params=pltpu.CompilerParams(vmem_limit_bytes=vmem_limit),
    )(z)                         # no wrapper-side cast: DMA input in native dtype
    return out[0, 0]


if __name__ == "__main__":
    key = jax.random.PRNGKey(0)
    B, D = 8, 32                      # batch (= 2N) x feature dim
    z = jax.random.normal(key, (B, D), dtype=jnp.float32)

    loss = iot_uni_loss(z, epsilon=0.5, iterations=10, lambda_p=0.2)
    jax.block_until_ready(loss)
    print("KERNEL_OK")
</pallas_src>

<mosaic_0001>
module attributes {stable_mosaic.version = 11 : i64} {
  func.func @_iot_uni_kernel(%arg0: memref<8x32xf32, #tpu.memory_space<vmem>>, %arg1: memref<1x1xf32, #tpu.memory_space<vmem>>) attributes {dimension_semantics = [], scalar_prefetch = 0 : i64, scratch_operands = 0 : i64, tpu.core_type = #tpu.core_type<tc>} {
    %c0 = arith.constant 0 : index
    %c0_0 = arith.constant 0 : index
    %0 = vector.load %arg0[%c0, %c0_0] : memref<8x32xf32, #tpu.memory_space<vmem>>, vector<8x32xf32>
    %1 = arith.mulf %0, %0 : vector<8x32xf32>
    %cst = arith.constant dense<0.000000e+00> : vector<8xf32>
    %2 = vector.multi_reduction <add>, %1, %cst [1] : vector<8x32xf32> to vector<8xf32>
    %3 = vector.shape_cast %2 : vector<8xf32> to vector<8x1xf32>
    %cst_1 = arith.constant 1.000000e-16 : f32
    %4 = vector.broadcast %cst_1 : f32 to vector<8x1xf32>
    %5 = arith.maximumf %3, %4 : vector<8x1xf32>
    %6 = math.rsqrt %5 : vector<8x1xf32>
    %7 = vector.broadcast %6 : vector<8x1xf32> to vector<8x32xf32>
    %8 = arith.mulf %0, %7 : vector<8x32xf32>
    %cst_2 = arith.constant dense<0.000000e+00> : vector<8x8xf32>
    %9 = tpu.matmul %8, %8, %cst_2 {dimension_numbers = #tpu.dot_dimension_numbers<[1], [1], [0], [0], [0, 0, 1, 0], [], []>} : vector<8x32xf32>, vector<8x32xf32>, vector<8x8xf32> -> vector<8x8xf32>
    %cst_3 = arith.constant 1.000000e+00 : f32
    %10 = vector.broadcast %cst_3 : f32 to vector<8x8xf32>
    %11 = arith.subf %10, %9 : vector<8x8xf32>
    %12 = vector.shape_cast %11 : vector<8x8xf32> to vector<1x8x8xf32>
    %cst_4 = arith.constant dense<0xFF800000> : vector<1xf32>
    %13 = vector.multi_reduction <maximumf>, %12, %cst_4 [1, 2] : vector<1x8x8xf32> to vector<1xf32>
    %14 = vector.shape_cast %13 : vector<1xf32> to vector<1x1x1xf32>
    %15 = vector.extract %14[0, 0, 0] : f32 from vector<1x1x1xf32>
    %16 = tpu.iota {dimensions = array<i32: 0>} : vector<8x8xi32>
    %17 = tpu.iota {dimensions = array<i32: 1>} : vector<8x8xi32>
    %18 = arith.cmpi eq, %16, %17 : vector<8x8xi32>
    %19 = vector.broadcast %15 : f32 to vector<8x8xf32>
    %20 = arith.select %18, %19, %11 : vector<8x8xi1>, vector<8x8xf32>
    %cst_5 = arith.constant -2.000000e+00 : f32
    %21 = vector.broadcast %cst_5 : f32 to vector<8x8xf32>
    %22 = arith.mulf %20, %21 : vector<8x8xf32>
    %23 = math.exp %22 : vector<8x8xf32>
    %cst_6 = arith.constant 1.000000e+00 : f32
    %24 = vector.broadcast %cst_6 : f32 to vector<8x1xf32>
    %cst_7 = arith.constant 1.000000e+00 : f32
    %25 = vector.broadcast %cst_7 : f32 to vector<1x8xf32>
    %c0_i32 = arith.constant 0 : i32
    %c5_i32 = arith.constant 5 : i32
    %26 = arith.addi %c0_i32, %c5_i32 : i32
    %c1_i32 = arith.constant 1 : i32
    %27 = scf.for %arg2 = %c0_i32 to %26 step %c1_i32 iter_args(%arg3 = %23) -> (vector<8x8xf32>)  : i32 {
      %cst_25 = arith.constant dense<0.000000e+00> : vector<8x1xf32>
      %84 = tpu.matmul %arg3, %24, %cst_25 {dimension_numbers = #tpu.dot_dimension_numbers<[1], [0], [0], [1], [0, 0, 1, 1], [], []>} : vector<8x8xf32>, vector<8x1xf32>, vector<8x1xf32> -> vector<8x1xf32>
      %85 = tpu.reciprocal %84 {approx = true} : vector<8x1xf32> -> vector<8x1xf32>
      %86 = vector.broadcast %85 : vector<8x1xf32> to vector<8x8xf32>
      %87 = arith.mulf %arg3, %86 : vector<8x8xf32>
      %cst_26 = arith.constant dense<0.000000e+00> : vector<1x8xf32>
      %88 = tpu.matmul %25, %87, %cst_26 {dimension_numbers = #tpu.dot_dimension_numbers<[1], [0], [0], [1], [0, 0, 1, 1], [], []>} : vector<1x8xf32>, vector<8x8xf32>, vector<1x8xf32> -> vector<1x8xf32>
      %89 = tpu.reciprocal %88 {approx = true} : vector<1x8xf32> -> vector<1x8xf32>
      %90 = vector.broadcast %89 : vector<1x8xf32> to vector<8x8xf32>
      %91 = arith.mulf %87, %90 : vector<8x8xf32>
      %cst_27 = arith.constant dense<0.000000e+00> : vector<1x8xf32>
      %92 = tpu.matmul %25, %91, %cst_27 {dimension_numbers = #tpu.dot_dimension_numbers<[1], [0], [0], [1], [0, 0, 1, 1], [], []>} : vector<1x8xf32>, vector<8x8xf32>, vector<1x8xf32> -> vector<1x8xf32>
      %93 = tpu.reciprocal %92 {approx = true} : vector<1x8xf32> -> vector<1x8xf32>
      %94 = vector.broadcast %93 : vector<1x8xf32> to vector<8x8xf32>
      %95 = arith.mulf %91, %94 : vector<8x8xf32>
      %cst_28 = arith.constant dense<0.000000e+00> : vector<8x1xf32>
      %96 = tpu.matmul %95, %24, %cst_28 {dimension_numbers = #tpu.dot_dimension_numbers<[1], [0], [0], [1], [0, 0, 1, 1], [], []>} : vector<8x8xf32>, vector<8x1xf32>, vector<8x1xf32> -> vector<8x1xf32>
      %97 = tpu.reciprocal %96 {approx = true} : vector<8x1xf32> -> vector<8x1xf32>
      %98 = vector.broadcast %97 : vector<8x1xf32> to vector<8x8xf32>
      %99 = arith.mulf %95, %98 : vector<8x8xf32>
      scf.yield %99 : vector<8x8xf32>
    }
    %28 = math.log %27 : vector<8x8xf32>
    %29 = tpu.iota {dimensions = array<i32: 0>} : vector<8x8xi32>
    %30 = tpu.iota {dimensions = array<i32: 1>} : vector<8x8xi32>
    %31 = arith.cmpi eq, %29, %30 : vector<8x8xi32>
    %c4_i32 = arith.constant 4 : i32
    %32 = vector.broadcast %c4_i32 : i32 to vector<8x8xi32>
    %33 = arith.addi %29, %32 : vector<8x8xi32>
    %34 = arith.cmpi eq, %30, %33 : vector<8x8xi32>
    %c4_i32_8 = arith.constant 4 : i32
    %35 = vector.broadcast %c4_i32_8 : i32 to vector<8x8xi32>
    %36 = arith.addi %30, %35 : vector<8x8xi32>
    %37 = arith.cmpi eq, %29, %36 : vector<8x8xi32>
    %38 = arith.ori %34, %37 : vector<8x8xi1>
    %cst_9 = arith.constant 0.000000e+00 : f32
    %39 = vector.broadcast %cst_9 : f32 to vector<8x8xf32>
    %40 = arith.select %38, %28, %39 : vector<8x8xi1>, vector<8x8xf32>
    %41 = vector.shape_cast %40 : vector<8x8xf32> to vector<1x8x8xf32>
    %cst_10 = arith.constant dense<0.000000e+00> : vector<1xf32>
    %42 = vector.multi_reduction <add>, %41, %cst_10 [1, 2] : vector<1x8x8xf32> to vector<1xf32>
    %43 = vector.shape_cast %42 : vector<1xf32> to vector<1x1x1xf32>
    %44 = vector.extract %43[0, 0, 0] : f32 from vector<1x1x1xf32>
    %45 = vector.shape_cast %27 : vector<8x8xf32> to vector<1x8x8xf32>
    %cst_11 = arith.constant dense<0.000000e+00> : vector<1xf32>
    %46 = vector.multi_reduction <add>, %45, %cst_11 [1, 2] : vector<1x8x8xf32> to vector<1xf32>
    %47 = vector.shape_cast %46 : vector<1xf32> to vector<1x1x1xf32>
    %48 = vector.extract %47[0, 0, 0] : f32 from vector<1x1x1xf32>
    %cst_12 = arith.constant 0.000000e+00 : f32
    %49 = vector.broadcast %cst_12 : f32 to vector<8x8xf32>
    %50 = arith.select %31, %27, %49 : vector<8x8xi1>, vector<8x8xf32>
    %51 = vector.shape_cast %50 : vector<8x8xf32> to vector<1x8x8xf32>
    %cst_13 = arith.constant dense<0.000000e+00> : vector<1xf32>
    %52 = vector.multi_reduction <add>, %51, %cst_13 [1, 2] : vector<1x8x8xf32> to vector<1xf32>
    %53 = vector.shape_cast %52 : vector<1xf32> to vector<1x1x1xf32>
    %54 = vector.extract %53[0, 0, 0] : f32 from vector<1x1x1xf32>
    %55 = vector.shape_cast %28 : vector<8x8xf32> to vector<1x8x8xf32>
    %cst_14 = arith.constant dense<0.000000e+00> : vector<1xf32>
    %56 = vector.multi_reduction <add>, %55, %cst_14 [1, 2] : vector<1x8x8xf32> to vector<1xf32>
    %57 = vector.shape_cast %56 : vector<1xf32> to vector<1x1x1xf32>
    %58 = vector.extract %57[0, 0, 0] : f32 from vector<1x1x1xf32>
    %cst_15 = arith.constant 0.000000e+00 : f32
    %59 = vector.broadcast %cst_15 : f32 to vector<8x8xf32>
    %60 = arith.select %31, %28, %59 : vector<8x8xi1>, vector<8x8xf32>
    %61 = vector.shape_cast %60 : vector<8x8xf32> to vector<1x8x8xf32>
    %cst_16 = arith.constant dense<0.000000e+00> : vector<1xf32>
    %62 = vector.multi_reduction <add>, %61, %cst_16 [1, 2] : vector<1x8x8xf32> to vector<1xf32>
    %63 = vector.shape_cast %62 : vector<1xf32> to vector<1x1x1xf32>
    %64 = vector.extract %63[0, 0, 0] : f32 from vector<1x1x1xf32>
    %cst_17 = arith.constant 0.000000e+00 : f32
    %65 = arith.subf %cst_17, %44 : f32
    %cst_18 = arith.constant 8.000000e+00 : f32
    %66 = arith.divf %65, %cst_18 : f32
    %67 = vector.broadcast %66 : f32 to vector<1x1xf32>
    %68 = arith.subf %48, %54 : f32
    %cst_19 = arith.constant 5.600000e+01 : f32
    %69 = arith.divf %68, %cst_19 : f32
    %70 = vector.broadcast %69 : f32 to vector<1x1xf32>
    %71 = arith.subf %58, %64 : f32
    %72 = vector.broadcast %71 : f32 to vector<1x1xf32>
    %73 = math.log %70 : vector<1x1xf32>
    %cst_20 = arith.constant 5.600000e+01 : f32
    %74 = vector.broadcast %cst_20 : f32 to vector<1x1xf32>
    %75 = arith.mulf %74, %73 : vector<1x1xf32>
    %76 = arith.subf %75, %72 : vector<1x1xf32>
    %77 = arith.mulf %70, %76 : vector<1x1xf32>
    %cst_21 = arith.constant 1.562500e-02 : f32
    %78 = vector.broadcast %cst_21 : f32 to vector<1x1xf32>
    %79 = arith.mulf %77, %78 : vector<1x1xf32>
    %cst_22 = arith.constant 2.000000e-01 : f32
    %80 = vector.broadcast %cst_22 : f32 to vector<1x1xf32>
    %81 = arith.mulf %80, %79 : vector<1x1xf32>
    %82 = arith.addf %67, %81 : vector<1x1xf32>
    %c0_23 = arith.constant 0 : index
    %c0_24 = arith.constant 0 : index
    %83 = vector.load %arg1[%c0_23, %c0_24] : memref<1x1xf32, #tpu.memory_space<vmem>>, vector<1x1xf32>
    tpu.vector_store %arg1[%c0_23, %c0_24], %82 {strides = array<i32>} : memref<1x1xf32, #tpu.memory_space<vmem>>, vector<1x1xf32>,
    return
  }
}

</mosaic_0001>

<bundles_post_ra>
// kernel: tpu_custom_call.1
= control target key start
LH: loop header
LB: loop body
LE: loop exit
PB: predicated region body
PF: predicated region fallthrough
CT: control target
= control target key end

     0   :  { %6 = vsyncpa [#allocation3], 0  ;;  %s794_s0 = inlined_call_operand.hbm [shape: f32[8,32], index: 0, kind: input, shape index: {}]   ;;  %s795_s1 = inlined_call_operand.hbm [shape: f32[1,1], index: 1, kind: output, shape index: {}]  }
   0x1   :  { %7 = vsyncpa [#allocation4], 0  ;;  %s710_s6 = smov [#allocation2]   ;;  %s646_s10 = scalar_lea.hbm %s794_s0, 128 }
   0x2   :  { %s14_s7 = sshll.u32 %s710_s6, 4  ;;  %p647_p0 = scmp.ne.s32.totalorder %s794_s0, %s646_s10  ;;  %s15_s7 = int_to_ptr.vmem [resolvable:$true] %s14_s7 }
   0x3   :  { %p650_p1 = scmp.lt.u32.totalorder %s646_s10, %s794_s0 }
   0x5   :  { %p652_p2 = pnand %p650_p1, %p647_p0 }
   0x7   :  { %655 = shalt.err (!%p652_p2)
}
   0x8   :  { %s656_s15 = scalar_lea.vmem %s15_s7, 128  ;;  %p661_p4 = scmp.lt.s32.totalorder %s15_s7, %s15_s7 }
   0x9   :  { %p657_p3 = scmp.ne.s32.totalorder %s15_s7, %s656_s15  ;;  %p662_p5 = scmp.lt.s32.totalorder %s656_s15, %s656_s15 }
   0xb   :  { %p663_p6 = por %p662_p5, %p661_p4 }
   0xd   :  { %p664_p7 = pnand %p663_p6, %p657_p3 }
   0xf   :  { %667 = shalt.err (!%p664_p7)
}
  0x10   :  { %17 = dma.hbm_to_vmem [thread:$0]  %s794_s0, 128, %s15_s7, [#allocation3]  }
  0x11   :  { %698 = dma.done.wait [#allocation3], 128  }
  0x12   :  { %699 = vsyncadd [#allocation3], 4294967168  ;;  %v21_v0 = vld [vmem:[#allocation2] sm:$0xff]  ;;  %vm23_vm0 = vcmask 261120   ;;  %v711_v3 = vmov 0.0   ;;  %vm712_vm1 = vmmov 0   ;;  %v115_v19 = vlaneseq }
  0x13   :  { %v22_v1 = vmul.f32 %v21_v0, %v21_v0  ;;  %568 = vmatprep.subr.mxu0 %v711_v3  ;;  %570 = vmatprep.mubr.msk.f32.mxu0 %vm712_vm1, %v711_v3  ;;  %vm104_vm2 = vcmask 64512   ;;  %s750_s18 = smov 0  }
  0x14   :  { %v741_v20 = vshrl.u32 %v115_v19, 7  ;;  %v743_v21 = vand.u32 127, %v115_v19 }
  0x15   :  { %v24_v2 = vsel %vm23_vm0, %v22_v1, 0.0 }
  0x16   :  { %25 = vadd.xlane.f32.xlu0 %v24_v2  ;;  %vm119_vm3 = vcmp.eq.s32.totalorder %v741_v20, %v743_v21 }
  0xa3   :  { %v26_v4 = vpop.xlane.xlu0 %25 }
  0xa4   :  { %v27_v5 = vmax.f32 %v26_v4, 1e-16 }
  0xa6   :  { %629 = vrsqrt.f32 %v27_v5 }
  0xb0   :  { %v630_v6 = vpop.eup %629 }
  0xb1   :  { %v29_v7 = vmul.f32 %v630_v6, %v21_v0 }
  0xb3   :  { %569 = vmatpush3.xpose.msk.msra.mxu0 %vm23_vm0, %v29_v7 }
  0xb6   :  { %571 = vmatmul.mubr.msk.f32.vlgmr.msra.gmra.mrb[0].mxu0 %vm23_vm0, %v29_v7 }
 0x189   :  { %v99_v8 = vpop.f32.mrb[0].mxu0 }
 0x18a   :  { %v103_v9 = vsub.f32 1.0, %v99_v8  ;;  %v572_v10 = vpop.f32.mrb[1].mxu0 }
 0x18c   :  { %v105_v11 = vsel %vm104_vm2, %v103_v9, -inf }
 0x18d   :  { %106 = vmax.xlane.f32.xlu0 %v105_v11 }
 0x21a   :  { %v107_v12 = vpop.xlane.xlu0 %106 }
 0x21b   :  { %v108_v13 = vrot.slane %v107_v12, 4 }
 0x21d   :  { %v109_v14 = vmax.f32 %v107_v12, %v108_v13 }
 0x21f   :  { %v110_v15 = vrot.slane %v109_v14, 2 }
 0x221   :  { %v111_v16 = vmax.f32 %v109_v14, %v110_v15 }
 0x223   :  { %v112_v17 = vrot.slane %v111_v16, 1 }
 0x225   :  { %v113_v18 = vmax.f32 %v111_v16, %v112_v17 }
 0x227   :  { %593 = vpush %v113_v18 }
 0x258   :  { %s594_s0 = spop %593 }
 0x259   :  { %v120_v22 = vstv %s594_s0 }
 0x25a   :  { %v121_v23 = vsel %vm119_vm3, %v120_v22, %v103_v9 }
 0x25b   :  { %v122_v24 = vmul.f32 -2.0, %v121_v23 }
 0x25d   :  { %v123_v25 = vmul.f32 1.442695, %v122_v24 }
 0x25f   :  { %631 = vpow2.f32 %v123_v25 }
 0x269   :  { %v632_v26 = vpop.eup %631  }
 0x26a   :  { %v702_v27 = vmov %v632_v26  }
 0x26b LB: > { %v713_v28 = vmov 0.0   ;;  %vm714_vm4 = vmmov 0   ;;  %v715_v29 = vmov 1.0   ;;  %v716_v30 = vmov 0   ;;  %s130_s18 = sadd.s32 1, %s708_s18   ;;  %s708_s18 = sphi %s750_s18, %s130_s18   ;;  %v704_v27 = vphi %v702_v27, %v703_v27  }
 0x26c   : > { %573 = vmatprep.subr.mxu0 %v713_v28  ;;  %575 = vmatprep.mubr.msk.f32.mxu0 %vm714_vm4, %v713_v28  ;;  %v288_v38 = vsub.s32 0, %v741_v20  ;;  %p127_p8 = scmp.ge.s32.totalorder %s130_s18, 5  }
 0x26d   : > { %574 = vmatpush3.msra.mxu0 %v715_v29  ;;  %578 = vmatprep.subr.mxu1 %v713_v28  ;;  %v449_v54 = vadd.s32 (%p127_p8), 4, %v741_v20  ;;  %v451_v55 = vadd.s32 (%p127_p8), 4, %v743_v21  ;;  %s717_s29 = smov (%p127_p8), [#allocation5]   ;;  %vm527_vm8 = vcmask (%p127_p8), 0  }
 0x26e   : > { %576 = vmatmul.mubr.msk.f32.vlgmr.msra.gmra.mrb[0].mxu0 %vm104_vm2, %v704_v27  ;;  %580 = vmatprep.mubr.msk.f32.mxu1 %vm714_vm4, %v713_v28  ;;  %s535_s30 = sshll.u32 (%p127_p8), %s717_s29, 4  ;;  %s536_s30 = int_to_ptr.vmem [resolvable:$true] %s535_s30 }
 0x26f   : > { %583 = vmatprep.subr.mxu0 %v713_v28  ;;  %585 = vmatprep.mubr.msk.f32.mxu0 %vm714_vm4, %v713_v28  ;;  %vm450_vm5 = vcmp.eq.s32.totalorder (%p127_p8), %v743_v21, %v449_v54  ;;  %vm452_vm6 = vcmp.eq.s32.totalorder (%p127_p8), %v741_v20, %v451_v55  ;;  %s668_s2 = scalar_lea.vmem (%p127_p8), %s536_s30, 16  ;;  %s672_s3 = scalar_lea.vmem (%p127_p8), %s536_s30, 32 }
 0x270   : > { %633 = vset.pattern.permute.xlu0 %v716_v30  ;;  %vm453_vm7 = vmor (%p127_p8), %vm450_vm5, %vm452_vm6  ;;  %p669_p9 = scmp.ne.s32.totalorder (%p127_p8), %s536_s30, %s668_s2  ;;  %p673_p10 = scmp.lt.s32.totalorder (%p127_p8), %s536_s30, %s536_s30 }
 0x271   :  { %p674_p11 = scmp.lt.s32.totalorder (%p127_p8), %s672_s3, %s668_s2 }
 0x273   :  { %p675_p12 = por (%p127_p8), %p674_p11, %p673_p10 }
 0x275   :  { %p676_p13 = pnand (%p127_p8), %p675_p12, %p669_p9 }
 0x341   : > { %v201_v31 = vpop.f32.mrb[0].mxu0 }
 0x342   : > { %634 = vrcp.f32 %v201_v31  ;;  %v577_v32 = vpop.f32.mrb[1].mxu0 }
 0x34c   : > { %v635_v33 = vpop.eup %634 }
 0x34d   : > { %208 = vperm.xlu0 %633, %v635_v33  }
 0x3cc   : > { %v209_v34 = vpop.permute.xlu0 %208 }
 0x3cd   : > { %v211_v35 = vmul.f32 %v704_v27, %v209_v34 }
 0x3cf   : > { %579 = vmatpush3.msra.mxu1 %v211_v35 }
 0x3d0   : > { %581 = vmatmul.mubr.msk.f32.vlgmr.msra.gmra.mrb[0].mxu1 %vm104_vm2, %v715_v29  ;;  %588 = vmatprep.subr.mxu1 %v713_v28 }
 0x3d1   : > { %589 = vmatpush3.msra.mxu1 %v715_v29  ;;  %590 = vmatprep.mubr.msk.f32.mxu1 %vm714_vm4, %v713_v28 }
 0x4a3   : > { %v281_v36 = vpop.f32.mrb[0].mxu1 }
 0x4a4   : > { %636 = vrcp.f32 %v281_v36  ;;  %v582_v37 = vpop.f32.mrb[1].mxu1 }
 0x4ae   : > { %v637_v39 = vpop.eup %636 }
 0x4af   : > { %v289_v40 = vrot.slane %v637_v39, %v288_v38 }
 0x4b1   : > { %v290_v41 = vmul.f32 %v289_v40, %v211_v35 }
 0x4b3   : > { %584 = vmatpush3.msra.mxu0 %v290_v41 }
 0x4b4   : > { %586 = vmatmul.mubr.msk.f32.vlgmr.msra.gmra.mrb[2].mxu0 %vm104_vm2, %v715_v29 }
 0x587   : > { %v357_v42 = vpop.f32.mrb[2].mxu0 }
 0x588   : > { %638 = vrcp.f32 %v357_v42  ;;  %v587_v43 = vpop.f32.mrb[3].mxu0 }
 0x592   : > { %v639_v44 = vpop.eup %638 }
 0x593   : > { %v365_v45 = vrot.slane %v639_v44, %v288_v38 }
 0x595   : > { %v366_v46 = vmul.f32 %v365_v45, %v290_v41 }
 0x597   : > { %591 = vmatmul.mubr.msk.f32.vlgmr.msra.gmra.mrb[2].mxu1 %vm104_vm2, %v366_v46 }
 0x66a   : > { %v436_v47 = vpop.f32.mrb[2].mxu1 }
 0x66b   : > { %640 = vrcp.f32 %v436_v47  ;;  %v592_v48 = vpop.f32.mrb[3].mxu1 }
 0x675   : > { %v641_v49 = vpop.eup %640 }
 0x676   : > { %443 = vperm.xlu0 %633, %v641_v49  }
 0x6f2   :  { %129 = sbr.rel (!%p127_p8) target bundleno = 619 (0x26b), region = 35 }
 0x6f5   : > { %v444_v50 = vpop.permute.xlu0 %443 }
 0x6f6   : > { %v446_v51 = vmul.f32 %v444_v50, %v366_v46  }
 0x6f8   : > { %v703_v27 = vmov %v446_v51   ;;  %v475_v52 = vsel (%p127_p8), %vm119_vm3, %v446_v51, 0.0  ;;  %642 = vlog2.f32 (%p127_p8), %v446_v51  ;;  %v465_v61 = vsel (%p127_p8), %vm104_vm2, %v446_v51, 0.0 }
 0x6f9   :  { %v476_v53 = vsel %vm104_vm2, %v475_v52, 0.0 }
 0x6fa   :  { %477 = vadd.xlane.f32.xlu1 %v476_v53 }
 0x702   :  { %v643_v56 = vpop.eup %642 }
 0x703   :  { %v448_v57 = vmul.f32 0.6931472, %v643_v56 }
 0x705   :  { %v454_v58 = vsel %vm453_vm7, %v448_v57, 0.0  ;;  %v486_v59 = vsel %vm104_vm2, %v448_v57, 0.0  ;;  %v496_v62 = vsel %vm119_vm3, %v448_v57, 0.0 }
 0x706   :  { %v455_v60 = vsel %vm104_vm2, %v454_v58, 0.0  ;;  %487 = vadd.xlane.f32.xlu1 %v486_v59  ;;  %v497_v63 = vsel %vm104_vm2, %v496_v62, 0.0 }
 0x707   :  { %456 = vadd.xlane.f32.xlu0 %v455_v60 }
 0x70b   :  { %466 = vadd.xlane.f32.xlu0 %v465_v61 }
 0x70f   :  { %498 = vadd.xlane.f32.xlu0 %v497_v63 }
 0x787   :  { %v478_v0 = vpop.xlane.xlu1 %477 }
 0x788   :  { %v479_v1 = vrot.slane %v478_v0, 4 }
 0x78a   :  { %v480_v3 = vadd.f32 %v479_v1, %v478_v0 }
 0x78c   :  { %v481_v9 = vrot.slane %v480_v3, 2 }
 0x78e   :  { %v482_v18 = vadd.f32 %v481_v9, %v480_v3 }
 0x790   :  { %v483_v26 = vrot.slane %v482_v18, 1 }
 0x792   :  { %v484_v32 = vadd.f32 %v483_v26, %v482_v18 }
 0x793   :  { %v488_v2 = vpop.xlane.xlu1 %487 }
 0x794   :  { %v457_v4 = vpop.xlane.xlu0 %456  ;;  %v489_v5 = vrot.slane %v488_v2, 4 }
 0x795   :  { %v458_v6 = vrot.slane %v457_v4, 4 }
 0x796   :  { %v490_v7 = vadd.f32 %v489_v5, %v488_v2 }
 0x797   :  { %v459_v8 = vadd.f32 %v458_v6, %v457_v4 }
 0x798   :  { %v467_v10 = vpop.xlane.xlu0 %466  ;;  %v491_v11 = vrot.slane %v490_v7, 2 }
 0x799   :  { %v460_v12 = vrot.slane %v459_v8, 2  ;;  %v468_v13 = vrot.slane %v467_v10, 4 }
 0x79a   :  { %v492_v16 = vadd.f32 %v491_v11, %v490_v7 }
 0x79b   :  { %v469_v14 = vadd.f32 %v468_v13, %v467_v10  ;;  %v461_v15 = vadd.f32 %v460_v12, %v459_v8 }
 0x79c   :  { %v499_v17 = vpop.xlane.xlu0 %498  ;;  %v493_v25 = vrot.slane %v492_v16, 1 }
 0x79d   :  { %v470_v19 = vrot.slane %v469_v14, 2  ;;  %v462_v20 = vrot.slane %v461_v15, 1  ;;  %v500_v21 = vrot.slane %v499_v17, 4 }
 0x79e   :  { %v494_v31 = vadd.f32 %v493_v25, %v492_v16 }
 0x79f   :  { %v463_v22 = vadd.f32 %v462_v20, %v461_v15  ;;  %v501_v23 = vadd.f32 %v500_v21, %v499_v17  ;;  %v471_v24 = vadd.f32 %v470_v19, %v469_v14 }
 0x7a1   :  { %595 = vpush %v463_v22  ;;  %v502_v27 = vrot.slane %v501_v23, 2  ;;  %v472_v28 = vrot.slane %v471_v24, 1 }
 0x7a3   :  { %v503_v29 = vadd.f32 %v502_v27, %v501_v23  ;;  %v473_v30 = vadd.f32 %v472_v28, %v471_v24 }
 0x7a5   :  { %597 = vpush %v473_v30  ;;  %v504_v33 = vrot.slane %v503_v29, 1 }
 0x7a6   :  { %599 = vpush %v484_v32 }
 0x7a7   :  { %601 = vpush %v494_v31  ;;  %v505_v34 = vadd.f32 %v504_v33, %v503_v29 }
 0x7a9   :  { %603 = vpush %v505_v34 }
 0x7d2   :  { %s596_s19 = spop %595 }
 0x7d3   :  { %s507_s27 = ssub.f32 0.0, %s596_s19 }
 0x7d5   :  { %s510_s28 = smul.f32 0.125, %s507_s27 }
 0x7d6   :  { %s598_s20 = spop %597 }
 0x7d7   :  { %s600_s21 = spop %599  ;;  %v511_v44 = vstv %s510_s28 }
 0x7d8   :  { %s512_s22 = ssub.f32 %s598_s20, %s600_s21  ;;  %s602_s24 = spop %601 }
 0x7da   :  { %s515_s23 = smul.f32 0.017857144, %s512_s22  ;;  %s604_s25 = spop %603 }
 0x7db   :  { %s517_s26 = ssub.f32 %s602_s24, %s604_s25 }
 0x7dc   :  { %v516_v35 = vstv %s515_s23 }
 0x7dd   :  { %644 = vlog2.f32 %v516_v35  ;;  %v518_v39 = vstv %s517_s26 }
 0x7e7   :  { %v645_v36 = vpop.eup %644 }
 0x7e8   :  { %v520_v37 = vmul.f32 0.6931472, %v645_v36 }
 0x7ea   :  { %v521_v38 = vmul.f32 56.0, %v520_v37 }
 0x7ec   :  { %v522_v40 = vsub.f32 %v521_v38, %v518_v39 }
 0x7ee   :  { %v523_v41 = vmul.f32 %v522_v40, %v516_v35 }
 0x7f0   :  { %v524_v42 = vmul.f32 0.015625, %v523_v41 }
 0x7f2   :  { %v525_v43 = vmul.f32 0.2, %v524_v42 }
 0x7f4   :  { %v526_v45 = vadd.f32 %v525_v43, %v511_v44 }
 0x7f6   :  { %528 = vst.msk [vmem:[#allocation5] sm:$0x1] %vm527_vm8, %v526_v45 }
 0x7f7   :  { %679 = shalt.err (!%p676_p13)
}
 0x7f8   :  { %s680_s6 = scalar_lea.hbm %s795_s1, 16 }
 0x7f9   :  { %p681_p0 = scmp.ne.s32.totalorder %s795_s1, %s680_s6  ;;  %p684_p1 = scmp.lt.u32.totalorder %s680_s6, %s795_s1 }
 0x7fb   :  { %p686_p2 = pnand %p684_p1, %p681_p0 }
 0x7fd   :  { %689 = shalt.err (!%p686_p2)
}
 0x7fe   :  { %538 = dma.vmem_to_hbm [thread:$0]  %s536_s30, 16, %s795_s1, [#allocation4]  }
 0x7ff   :  { %700 = dma.done.wait [#allocation4], 16  }
 0x800   :  { %701 = vsyncadd [#allocation4], 4294967280 }
 0x801   :  { %542 = vsyncpa [#allocation3], 1 }
 0x802   :  { %543 = vsyncpa [#allocation4], 1 }

</bundles_post_ra>
